<compile_context>
chip_gen: v6e
topology: v6e:2x2x1
jax: 0.10.0
libtpu: 0.0.40
codegen_flags: <defaults>
</compile_context>

<pallas_src>
import jax
import jax.numpy as jnp
from jax.experimental import pallas as pl
from jax.experimental.pallas import tpu as pltpu


def _round_up(x, m):
    return (x + m - 1) // m * m


def _patch_embed_kernel(x_ref, w_ref, b_ref, o_ref):
    # x_ref: (tm, K_pad) patches, w_ref: (K_pad, tn) projection, b_ref: (1, tn) f32 bias
    acc = jnp.dot(x_ref[...], w_ref[...], preferred_element_type=jnp.float32)
    o_ref[...] = (acc + b_ref[...]).astype(o_ref.dtype)


def patch_embed(x, weight, bias, patch_size, *, compute_dtype=jnp.bfloat16,
                out_dtype=None):
    """x: (B, C, H, W); weight: (E, C, ph, pw); bias: (E,) -> (B, P, E).

    out_dtype defaults to x.dtype; pass jnp.bfloat16 when the downstream
    consumer is bf16 to halve output HBM writeback.
    """
    B, C, H, W = x.shape
    E = weight.shape[0]
    ph, pw = patch_size
    assert H % ph == 0 and W % pw == 0, "img_size must be divisible by patch_size"
    Hn, Wn = H // ph, W // pw
    P = Hn * Wn
    K = C * ph * pw
    M = B * P
    out_dtype = x.dtype if out_dtype is None else out_dtype

    cbytes = jnp.dtype(compute_dtype).itemsize
    obytes = jnp.dtype(out_dtype).itemsize

    # --- glue: cast first (half-size intermediate), extract patches in conv
    # order (row-major h', w'; flatten (C, ph, pw)), pad K to a lane multiple.
    # With allow_input_fusion this chain is fused into the kernel's input DMA.
    K_pad = _round_up(K, 128)

    xp = x.astype(compute_dtype).reshape(B, C, Hn, ph, Wn, pw)
    xp = jnp.transpose(xp, (0, 2, 4, 1, 3, 5)).reshape(M, K)      # (B*P, C*ph*pw)
    w2 = weight.astype(compute_dtype).reshape(E, K).T             # (K, E)
    b2 = bias.astype(jnp.float32).reshape(1, E)                   # f32 bias
    if K_pad != K:
        xp = jnp.pad(xp, ((0, 0), (0, K_pad - K)))
        w2 = jnp.pad(w2, ((0, K_pad - K), (0, 0)))

    # --- tile selection ---
    # Full weight resident (single E block) for any realistic embed_dim.
    if E <= 2048:
        tn = E                       # block == full dim -> always layout-legal
    else:
        tn = 512                     # TODO(synk): rare huge-E fallback; re-reads xp per E tile
    grid_n = pl.cdiv(E, tn)

    if M >= 1024:
        tm = 1024
    else:
        tm = _round_up(M, 16)
    # v7x has 2 TensorCores; make sure the "parallel" M axis has >= 2 programs
    # whenever there is enough work to split.
    if pl.cdiv(M, tm) < 2 and M > 16:
        tm = _round_up(pl.cdiv(M, 2), 16)
    if tm >= M:
        tm = M                       # full-extent block is always layout-legal

    def _vmem_est(tm_, tn_):
        # double-buffered x / weight / out tiles + f32 bias
        return (2 * tm_ * K_pad * cbytes + 2 * K_pad * tn_ * cbytes
                + 2 * tm_ * tn_ * obytes + 2 * tn_ * 4)

    while _vmem_est(tm, tn) > 40 * 2**20 and tm > 128:
        tm = max(128, tm // 2)       # keep tiles comfortably inside v7x's 64 MiB

    grid_m = pl.cdiv(M, tm)

    est = _vmem_est(tm, tn)
    # Pass ~2x the estimate directly with headroom; cap below v7x physical VMEM.
    vmem_limit = int(min(48 * 2**20, 2 * est + (8 << 20)))

    cost = pl.CostEstimate(
        flops=2 * M * K_pad * E,
        transcendentals=0,
        bytes_accessed=(M * K_pad * cbytes + K_pad * E * cbytes
                        + E * 4 + M * E * obytes),
    )

    out = pl.pallas_call(
        _patch_embed_kernel,
        out_shape=jax.ShapeDtypeStruct((M, E), out_dtype),
        grid=(grid_n, grid_m),       # E outer (usually extent 1), M inner/fast
        in_specs=[
            pl.BlockSpec((tm, K_pad), lambda j, i: (i, 0)),
            pl.BlockSpec((K_pad, tn), lambda j, i: (0, j)),  # resident: index constant over i
            pl.BlockSpec((1, tn), lambda j, i: (0, j)),
        ],
        out_specs=pl.BlockSpec((tm, tn), lambda j, i: (i, j)),
        compiler_params=pltpu.CompilerParams(
            dimension_semantics=("parallel", "parallel"),
            vmem_limit_bytes=vmem_limit,
            # Allow the patch-extraction transpose/pad producing xp to fuse
            # into the pallas input read (kills the extra HBM round-trip).
            allow_input_fusion=(True, False, False),
        ),
        cost_estimate=cost,
    )(xp, w2, b2)

    return out.reshape(B, P, E)


def _reference(x, weight, bias, patch_size):
    # pure-JAX reference: conv2d with stride == kernel, then flatten/transpose
    out = jax.lax.conv_general_dilated(
        x, weight, window_strides=patch_size, padding="VALID",
        dimension_numbers=("NCHW", "OIHW", "NCHW"))
    out = out + bias.reshape(1, -1, 1, 1)
    B, E, Hn, Wn = out.shape
    return jnp.transpose(out.reshape(B, E, Hn * Wn), (0, 2, 1))


if __name__ == "__main__":
    # small PatchEmbed config: img_size=16, patch_size=4, in_chans=4, embed_dim=32
    B, C, H, W = 2, 4, 16, 16
    ph = pw = 4
    E = 32

    key = jax.random.PRNGKey(0)
    kx, kw, kb = jax.random.split(key, 3)
    x = jax.random.normal(kx, (B, C, H, W), dtype=jnp.float32)
    weight = jax.random.normal(kw, (E, C, ph, pw), dtype=jnp.float32) * 0.02
    bias = jax.random.normal(kb, (E,), dtype=jnp.float32) * 0.02

    fn = jax.jit(lambda xx, ww, bb: patch_embed(xx, ww, bb, (ph, pw)))
    out = jax.block_until_ready(fn(x, weight, bias))

    # Reference on bf16-rounded inputs (kernel computes bf16 x bf16 -> f32 acc).
    x_q = x.astype(jnp.bfloat16).astype(jnp.float32)
    w_q = weight.astype(jnp.bfloat16).astype(jnp.float32)
    ref = _reference(x_q, w_q, bias, (ph, pw))

    assert out.shape == (B, (H // ph) * (W // pw), E), out.shape
    assert jnp.allclose(out, ref, atol=1e-3, rtol=1e-3), "mismatch vs reference"

    print("KERNEL_OK")
</pallas_src>

<mosaic_0001>
module attributes {stable_mosaic.version = 11 : i64} {
  func.func @_patch_embed_kernel(%arg0: i32, %arg1: i32, %arg2: memref<16x128xbf16, #tpu.memory_space<vmem>>, %arg3: memref<128x32xbf16, #tpu.memory_space<vmem>>, %arg4: memref<1x32xf32, #tpu.memory_space<vmem>>, %arg5: memref<16x32xf32, #tpu.memory_space<vmem>>) attributes {dimension_semantics = [#tpu.dimension_semantics<parallel>, #tpu.dimension_semantics<parallel>], iteration_bounds = array<i64: 1, 2>, scalar_prefetch = 0 : i64, scratch_operands = 0 : i64, tpu.core_type = #tpu.core_type<tc>, window_params = [{transform_indices = @transform_0, window_bounds = array<i64: 16, 128>}, {transform_indices = @transform_1, window_bounds = array<i64: 128, 32>}, {transform_indices = @transform_2, window_bounds = array<i64: 1, 32>}, {transform_indices = @transform_3, window_bounds = array<i64: 16, 32>}]} {
    %c0 = arith.constant 0 : index
    %c0_0 = arith.constant 0 : index
    %0 = vector.load %arg2[%c0, %c0_0] : memref<16x128xbf16, #tpu.memory_space<vmem>>, vector<16x128xbf16>
    %c0_1 = arith.constant 0 : index
    %c0_2 = arith.constant 0 : index
    %1 = vector.load %arg3[%c0_1, %c0_2] : memref<128x32xbf16, #tpu.memory_space<vmem>>, vector<128x32xbf16>
    %cst = arith.constant dense<0.000000e+00> : vector<16x32xf32>
    %2 = tpu.matmul %0, %1, %cst {dimension_numbers = #tpu.dot_dimension_numbers<[1], [0], [0], [1], [0, 0, 1, 1], [], []>} : vector<16x128xbf16>, vector<128x32xbf16>, vector<16x32xf32> -> vector<16x32xf32>
    %c0_3 = arith.constant 0 : index
    %c0_4 = arith.constant 0 : index
    %3 = vector.load %arg4[%c0_3, %c0_4] : memref<1x32xf32, #tpu.memory_space<vmem>>, vector<1x32xf32>
    %4 = vector.broadcast %3 : vector<1x32xf32> to vector<16x32xf32>
    %5 = arith.addf %2, %4 : vector<16x32xf32>
    %c0_5 = arith.constant 0 : index
    %c0_6 = arith.constant 0 : index
    %6 = vector.load %arg5[%c0_5, %c0_6] : memref<16x32xf32, #tpu.memory_space<vmem>>, vector<16x32xf32>
    tpu.vector_store %arg5[%c0_5, %c0_6], %5 {strides = array<i32>} : memref<16x32xf32, #tpu.memory_space<vmem>>, vector<16x32xf32>,
    return
  }
  func.func @transform_0(%arg0: i32, %arg1: i32) -> (i32, i32) {
    %c0_i32 = arith.constant 0 : i32
    %c0_i32_0 = arith.constant 0 : i32
    return %arg1, %c0_i32 : i32, i32
  }
  func.func @transform_1(%arg0: i32, %arg1: i32) -> (i32, i32) {
    %c0_i32 = arith.constant 0 : i32
    %c0_i32_0 = arith.constant 0 : i32
    return %c0_i32, %arg0 : i32, i32
  }
  func.func @transform_2(%arg0: i32, %arg1: i32) -> (i32, i32) {
    %c0_i32 = arith.constant 0 : i32
    %c0_i32_0 = arith.constant 0 : i32
    return %c0_i32, %arg0 : i32, i32
  }
  func.func @transform_3(%arg0: i32, %arg1: i32) -> (i32, i32) {
    %c0_i32 = arith.constant 0 : i32
    return %arg1, %arg0 : i32, i32
  }
}

</mosaic_0001>

<bundles_post_ra>
// kernel: _lambda_.2
= control target key start
LH: loop header
LB: loop body
LE: loop exit
PB: predicated region body
PF: predicated region fallthrough
CT: control target
= control target key end

     0   :  { %s884_s0 = inlined_call_operand.vmem [shape: bf16[128,32], index: 0, kind: input, shape index: {}]   ;;  %s885_s1 = inlined_call_operand.vmem [shape: f32[1,32], index: 1, kind: input, shape index: {}]   ;;  %s886_s2 = inlined_call_operand.vmem [shape: bf16[32,64], index: 2, kind: input, shape index: {}]   ;;  %s887_s3 = inlined_call_operand.<no memory space> [shape: bf16[], index: 3, kind: input, shape index: {}]   ;;  %s888_s4 = inlined_call_operand.hbm [shape: f32[32,32], index: 4, kind: output, shape index: {}]  }
   0x1   :  { %v9_v0 = vstv %s887_s3 }
   0x2   :  { %v740_v1 = vunpack.i.l.bf16 %v9_v0 }
   0x3   :  { %14 = vsyncpa [#allocation8], 0 }
   0x4   :  { %16 = vsyncpa [#allocation8 + $0x1], 0  ;;  %s742_s17 = smov 0   ;;  %s744_s18 = smov 0  }
   0x5   :  { %s746_s19 = smov 0   ;;  %s748_s20 = smov 0  }
   0x6   :  { %s750_s21 = smov 0   ;;  %s752_s22 = smov 0  }
   0x7 LB: > { %s505_s3 = sadd.s32 4294967295, %s705_s22   ;;  %s506_s23 = sadd.s32 4294967294, %s705_s22   ;;  %s705_s22 = sphi %s752_s22, %s22_s22   ;;  %s701_s21 = sphi %s750_s21, %s895_s21   ;;  %s697_s20 = sphi %s748_s20, %s894_s20   ;;  %s693_s19 = sphi %s746_s19, %s893_s19   ;;  %s689_s18 = sphi %s744_s18, %s892_s18   ;;  %s685_s17 = sphi %s742_s17, %s891_s17  }
   0x8   : > { %s31_s24 = sadd.s32 1, %s701_s21  ;;  %s121_s25 = sadd.s32 1, %s693_s19 }
   0x9   : > { %p32_p0 = scmp.ge.s32.totalorder %s31_s24, 2  ;;  %p131_p1 = scmp.ne.s32.totalorder %s693_s19, %s689_s18 }
   0xa   : > { %p132_p2 = scmp.eq.s32.totalorder %s505_s3, 1  ;;  %p137_p3 = scmp.ne.s32.totalorder %s689_s18, %s685_s17 }
   0xb   : > { %s897_s24 = smov (%p32_p0, %s31_s24), 0  ;;  %p138_p5 = scmp.eq.s32.totalorder %s506_s23, 1 }
   0xc   : > { %p782_p4 = por %p132_p2, %p131_p1  ;;  %s116_s27 = ssub.s32 %s701_s21, %s897_s24 }
   0xd   : > { %p511_p6 = scmp.ge.s32.totalorder %s705_s22, 1  ;;  %p119_p7 = scmp.eq.s32.totalorder %s116_s27, 0 }
   0xe   : > { %p789_p8 = por %p138_p5, %p137_p3  ;;  %p178_p9 = scmp.lt.s32.totalorder %s705_s22, 3 }
   0xf   : > { %s795_s29 = scalar_select %p119_p7, %s693_s19, %s121_s25  }
  0x10   : > { %p179_p10 = pnand %p511_p6, %p178_p9 }
  0x12   : > { %182 = sbr.rel (%p179_p10) target bundleno = 269 (0x10d), region = 32 }
  0x17   : > { %v620_v2 = vld [vmem:[%s884_s0 + $0x38] sm:$0xff]   ;;  %v707_v3 = vmov 0.0   ;;  %v235_v4 = vlaneseq  ;;  %v621_v5 = vld [vmem:[%s884_s0 + $0x30] sm:$0xff]   ;;  %vm708_vm0 = vmmov 0   ;;  %s513_s8 = sshll.u32 %s697_s20, 1  ;;  %v622_v7 = vld [vmem:[%s884_s0 + $0x28] sm:$0xff]  }
  0x18   : > { %541 = vmatprep.subr.bf16.mxu0 %v707_v3  ;;  %557 = vmatprep.mubr.msk.bf16.mxu0 %vm708_vm0, %v707_v3  ;;  %p210_p11 = scmp.lt.s32.totalorder %s513_s8, 3  ;;  %v623_v9 = vld [vmem:[%s884_s0 + $0x20] sm:$0xff]   ;;  %v624_v16 = vld [vmem:[%s884_s0 + $0x18] sm:$0xff]   ;;  %v625_v17 = vld [vmem:[%s884_s0 + $0x10] sm:$0xff]   ;;  %vm388_vm2 = vcmask 261120  }
  0x19   : > { %542 = vmatpush3.bf16.msra.mxu0 %v620_v2  ;;  %v236_v6 = vand.u32 127, %v235_v4  ;;  %v626_v18 = vld [vmem:[%s884_s0 + $0x8] sm:$0xff]   ;;  %v627_v19 = vld [vmem:[%s884_s0] sm:$0xff]  }
  0x1a   : > { %543 = vmatprep.subr.bf16.mxu0 %v707_v3  ;;  %s899_s8 = smov (!%p210_p11, %s513_s8), 3  ;;  %v516_v21 = vld [vmem:[%s885_s1] ss:$0 sm:$0xff] }
  0x1b   : > { %s514_s11 = sshll.u32 %s899_s8, 2  ;;  %vm238_vm1 = vcmp.lt.s32.totalorder %v236_v6, 64  ;;  %s206_s8 = sand.u32 1, %s689_s18  }
  0x1c   : > { %s213_s14 = scalar_lea.vmem %s886_s2, %s514_s11  ;;  %s512_s9 = sshll.u32 %s206_s8, 4 }
  0x1d   : > { %544 = vmatpush3.bf16.msra.mxu0 %v621_v5  ;;  %v232_v8 = vld [vmem:[%s213_s14] sm:$0xff]   ;;  %s208_s12 = scalar_lea.vmem [#allocation7], %s512_s9  ;;  %s531_s14 = sshll.u32 %s697_s20, 8 }
  0x1e   : > { %545 = vmatprep.subr.bf16.mxu0 %v707_v3  ;;  %v233_v10 = vunpack.c.l.bf16 %v232_v8  ;;  %v255_v11 = vunpack.c.h.bf16 %v232_v8  ;;  %s406_s13 = sshll.u32 %s208_s12, 4  ;;  %s837_s3 = scalar_lea.hbm %s888_s4, %s531_s14  ;;  %s832_s13 = int_to_ptr.vmem [resolvable:$true] %s406_s13 }
  0x1f   : > { %s839_s23 = scalar_lea.sflag [#allocation8], %s206_s8  ;;  %s629_s25 = scalar_lea.vmem %s832_s13, 256 }
  0x20   : > { %v239_v12 = vsel %vm238_vm1, %v233_v10, %v740_v1  ;;  %v261_v13 = vsel %vm238_vm1, %v255_v11, %v740_v1  ;;  %p630_p12 = scmp.ne.s32.totalorder %s832_s13, %s629_s25  ;;  %s709_s20 = smov [#allocation7]  }
  0x21   : > { %546 = vmatpush3.bf16.msra.mxu0 %v622_v7  ;;  %v240_v14 = vpack.c.bf16 %v707_v3, %v239_v12  ;;  %v263_v15 = vpack.c.bf16 %v707_v3, %v261_v13  ;;  %s633_s27 = sshll.u32 %s709_s20, 4  ;;  %s634_s27 = int_to_ptr.vmem [resolvable:$false] %s633_s27 }
  0x22   : > { %547 = vmatprep.subr.bf16.mxu0 %v707_v3  ;;  %p631_p13 = pnand %p630_p12, %p782_p4  ;;  %s635_s30 = scalar_lea.vmem %s634_s27, 512 }
  0x23   : > { %243 = vst [vmem:[#allocation9] sm:$0xf] %v240_v14  ;;  %266 = vst [vmem:[#allocation9 + $0x4] sm:$0xf] %v263_v15  ;;  %p636_p1 = scmp.lt.s32.totalorder %s832_s13, %s634_s27  ;;  %p637_p2 = scmp.lt.s32.totalorder %s635_s30, %s629_s25 }
  0x24   : > { %p632_p0 = pneg %p631_p13 }
  0x25   : > { %548 = vmatpush3.bf16.msra.mxu0 %v623_v9  ;;  %p638_p3 = por %p637_p2, %p636_p1 }
  0x26   : > { %549 = vmatprep.subr.bf16.mxu0 %v707_v3 }
  0x27   : > { %p639_p5 = pnand %p638_p3, %p632_p0 }
  0x29   : > { %550 = vmatpush3.bf16.msra.mxu0 %v624_v16 }
  0x2a   : > { %551 = vmatprep.subr.bf16.mxu0 %v707_v3  ;;  %v628_v20 = vld [vmem:[#allocation9] sm:$0xff]  }
  0x2d   : > { %552 = vmatpush3.bf16.msra.mxu0 %v625_v17 }
  0x2e   : > { %553 = vmatprep.subr.bf16.mxu0 %v707_v3 }
  0x31   : > { %554 = vmatpush3.bf16.msra.mxu0 %v626_v18 }
  0x32   : > { %555 = vmatprep.subr.bf16.mxu0 %v707_v3 }
  0x35   : > { %556 = vmatpush3.bf16.msra.mxu0 %v627_v19 }
  0x38   : > { %558 = vmatmul.mubr.bf16.vlgmr.msra.gmra.mxu0 %v628_v20 }
  0xf8   : > { %v381_v22 = vpop.f32.mrf.mxu0 }
  0xf9   : > { %v382_v23 = vadd.f32 %v516_v21, %v381_v22 }
  0xfa   : > { %v559_v24 = vpop.f32.mrf.mxu0 }
  0xfb   : > { %389 = vst.msk [vmem:[%s208_s12] sm:$0xff] %vm388_vm2, %v382_v23 }
  0xfc   : > { %v384_v25 = vpop.f32.mrf.mxu0 }
  0xfd   : > { %v385_v26 = vadd.f32 %v516_v21, %v384_v25 }
  0xfe   : > { %v560_v27 = vpop.f32.mrf.mxu0 }
  0xff   : > { %390 = vst.msk [vmem:[%s208_s12 + $0x8] sm:$0xff] %vm388_vm2, %v385_v26 }
 0x100   : > { %642 = shalt.err (!%p639_p5)
}
 0x101   : > { %s643_s5 = scalar_lea.hbm %s837_s3, 256  ;;  %s647_s8 = scalar_lea.hbm %s888_s4, 512 }
 0x102   : > { %p644_p6 = scmp.ne.s32.totalorder %s837_s3, %s643_s5  ;;  %p648_p10 = scmp.lt.s32.totalorder %s837_s3, %s888_s4 }
 0x103   : > { %p649_p11 = scmp.lt.s32.totalorder %s647_s8, %s643_s5 }
 0x104   : > { %p645_p7 = pnand %p644_p6, %p782_p4 }
 0x105   : > { %p650_p12 = por %p649_p11, %p648_p10 }
 0x106   : > { %p646_p9 = pneg %p645_p7 }
 0x108   : > { %p651_p13 = pnand %p650_p12, %p646_p9 }
 0x10a   : > { %654 = shalt.err (!%p651_p13)
}
 0x10b   : > { %s710_s11 = smov 128   ;;  %s711_s12 = smov 8  }
 0x10c   : > { %561 = dma.vmem_to_hbm [thread:$0]  (%p782_p4), %s832_s13, 256, %s837_s3, %s839_s23, %s710_s11, %s710_s11, %s711_s12  }
 0x10d PF: > { %p567_p0 = scmp.ge.s32.totalorder %s705_s22, 2  ;;  %s421_s14 = sand.u32 1, %s685_s17  }
 0x10e   : > { %s422_s15 = scalar_lea.sflag [#allocation8], %s421_s14 }
 0x10f   : > { %p564_p1 = pnand %p567_p0, %p789_p8 }
 0x111   : > { %p565_p2 = pneg %p564_p1 }
 0x113   : > { %680 = dma.done.wait (%p565_p2), %s422_s15, 256  }
 0x114   : > { %682 = vsyncadd (%p565_p2), %s422_s15, 4294967040  ;;  %s22_s22 = sadd.s32 1, %s705_s22   ;;  %s891_s17 = smov %s689_s18 }
 0x115   : > { %p19_p3 = scmp.ge.s32.totalorder %s22_s22, 4   ;;  %s892_s18 = smov %s693_s19 }
 0x116   : > { %s893_s19 = smov %s795_s29  ;;  %s894_s20 = smov %s701_s21 }
 0x117   : > { %s895_s21 = smov %s897_s24  ;;  %21 = sbr.rel (!%p19_p3) target bundleno = 7 (0x7), region = 75 }
 0x11c   :  { %427 = vsyncpa [#allocation8], 1 }
 0x11d   :  { %429 = vsyncpa [#allocation8 + $0x1], 1 }

</bundles_post_ra>
